<compile_context>
chip_gen: v5e
topology: v5e:2x2
jax: 0.10.0
libtpu: 0.0.40
codegen_flags: <defaults>
</compile_context>

<pallas_src>
import functools
import inspect

import jax
import jax.numpy as jnp
from jax.experimental import pallas as pl
from jax.experimental.pallas import tpu as pltpu


def _block_spec_supports_pipeline_mode():
    try:
        return "pipeline_mode" in inspect.signature(pl.BlockSpec).parameters
    except (TypeError, ValueError):
        return False


_HAS_SINGLE_BUFFER = hasattr(pl, "Buffered") and _block_spec_supports_pipeline_mode()


# ---------------------------------------------------------------------------
# Kernels
# ---------------------------------------------------------------------------

def _gather_kernel_resident(id_ref, w_ref, out_ref):
    """Whole codebook resident in VMEM: one unconditional store per query tile."""
    ids = id_ref[...]                                    # (TQ, 1) int32 on the sublane axis
    tq = ids.shape[0]
    tk = w_ref.shape[0]
    col = jax.lax.broadcasted_iota(jnp.int32, (tq, tk), 1)
    onehot = (ids == col).astype(w_ref.dtype)            # lane-broadcast compare
    out_ref[...] = jnp.dot(
        onehot, w_ref[...], preferred_element_type=jnp.float32
    ).astype(out_ref.dtype)


def _gather_kernel_ktiled(id_ref, w_ref, out_ref, *, tk):
    """Codebook tiled along K; output block is resident across the K grid axis."""
    kblk = pl.program_id(1)
    # Fold the K-block offset into the ids ((TQ,1) VPU op) so the (TQ,TK) iota
    # below is grid-invariant (no per-step full-tile i32 add).
    ids = id_ref[...] - kblk * tk
    tq = ids.shape[0]
    col = jax.lax.broadcasted_iota(jnp.int32, (tq, tk), 1)
    onehot = (ids == col).astype(w_ref.dtype)
    part = jnp.dot(onehot, w_ref[...], preferred_element_type=jnp.float32)

    @pl.when(kblk == 0)
    def _():
        out_ref[...] = part.astype(out_ref.dtype)

    @pl.when(kblk > 0)
    def _():
        out_ref[...] += part.astype(out_ref.dtype)


# ---------------------------------------------------------------------------
# Tiling / generation-aware planning
# ---------------------------------------------------------------------------

def _round_up(x, m):
    return ((x + m - 1) // m) * m


def _chip_params():
    """Return (tensorcores_per_chip, usable VMEM cap in bytes) for the local TPU."""
    kind = ""
    devs = jax.devices()
    if devs and devs[0].platform == "tpu":
        kind = devs[0].device_kind.lower()
    if "v7" in kind:
        # 64 MiB physical per TC: leave headroom for Mosaic internal scratch
        # and the f32 matmul's bf16 pass copies.
        return 2, 44 << 20
    if "v6" in kind:
        return 1, 88 << 20          # 128 MiB physical
    if "v5" in kind and ("lite" in kind or "v5e" in kind):
        return 1, 88 << 20          # 128 MiB physical
    # Unknown generation: single-core, conservative budget.
    return 1, 40 << 20


def _resident_vmem(tq, k, d):
    # 2 weight copies budgeted even when single-buffering is requested,
    # + double-buffered output + ids + one-hot/iota/bf16-pass temporaries.
    return 2 * k * d * 4 + 2 * tq * d * 4 + 2 * tq * 4 + tq * k * 12


def _tiled_vmem(tq, tk, d):
    return 2 * tk * d * 4 + 2 * tq * d * 4 + 2 * tq * 4 + tq * tk * 12


def _choose_tq(n, num_tc, target):
    """Query-tile rows. Only split into >=2 blocks when that feeds a second TC."""
    n8 = max(8, _round_up(n, 8))
    if num_tc >= 2 and n8 >= 256:
        half = _round_up((n8 + 1) // 2, 8)
        return min(target, half)
    return min(target, n8)


def _pick_tk(k, d, cap, tq, tk_rows_max=4096):
    """Largest multiple-of-8 K tile fitting `cap`; prefer one that divides K."""
    limit = min(k, tk_rows_max)
    best_div = None
    t = 8
    while t <= limit:
        if _tiled_vmem(tq, t, d) <= cap and k % t == 0:
            best_div = t
        t += 8
    if best_div is not None:
        return best_div, k
    best = None
    t = 8
    while t <= tk_rows_max:
        if _tiled_vmem(tq, t, d) <= cap:
            best = t
        t += 8
    if best is None:
        return None, k
    return best, _round_up(k, best)   # rare: pad the codebook rows


def _select_plan(n, k, d, num_tc, cap):
    # 1) Preferred: whole codebook resident in VMEM (kt == 1). It is DMA'd once
    #    and never re-streamed; query tiles then sit at the output-write roofline.
    tq0 = _choose_tq(n, num_tc, 512)
    for tq in sorted({tq0, min(tq0, 256), min(tq0, 128), min(tq0, 64)}, reverse=True):
        if _resident_vmem(tq, k, d) <= cap:
            return dict(mode="resident", tq=tq, tk=k, kt=1, k_pad=k)

    # 2) K-tiled fallback for very large codebooks. A large TQ amortises the
    #    per-query-tile codebook re-stream (g * K * D bytes).
    tq_target = 1024 if num_tc >= 2 else 2048
    tq = _choose_tq(n, num_tc, tq_target)
    while True:
        tk, k_pad = _pick_tk(k, d, cap, tq)
        if tk is not None:
            return dict(mode="tiled", tq=tq, tk=tk, kt=k_pad // tk, k_pad=k_pad)
        if tq <= 8:
            k_pad = _round_up(k, 8)
            return dict(mode="tiled", tq=8, tk=8, kt=k_pad // 8, k_pad=k_pad)
        tq = max(8, _round_up(tq // 2, 8))


# ---------------------------------------------------------------------------
# Public wrapper
# ---------------------------------------------------------------------------

def codebook_embedding(embed_id, weight):
    """Pallas TPU equivalent of F.embedding(embed_id, weight)."""
    k, d = weight.shape
    orig_shape = embed_id.shape
    ids_flat = embed_id.reshape(-1).astype(jnp.int32)
    n = int(ids_flat.shape[0])
    if n == 0:
        return jnp.zeros(orig_shape + (d,), dtype=weight.dtype)

    num_tc, cap = _chip_params()
    plan = _select_plan(n, k, d, num_tc, cap)
    tq, tk, kt, k_pad = plan["tq"], plan["tk"], plan["kt"], plan["k_pad"]

    g = pl.cdiv(n, tq)
    n_pad = g * tq
    if n_pad != n:
        ids_flat = jnp.pad(ids_flat, (0, n_pad - n))   # padded ids gather row 0; sliced off below
    ids_col = ids_flat.reshape(n_pad, 1)               # ids on the sublane axis

    w_in = weight
    if k_pad != k:
        # Rare path (K has no suitable multiple-of-8 divisor): pad codebook rows.
        w_in = jnp.pad(weight, ((0, k_pad - k), (0, 0)))

    est = (_resident_vmem(tq, k_pad, d) if plan["mode"] == "resident"
           else _tiled_vmem(tq, tk, d))
    vmem_limit = int(min(cap, max(4 * est, 16 << 20)))

    # Advisory cost so XLA schedules the surrounding pad/reshape/slice ops
    # around (and overlapping with) the custom call.
    weight_bytes_streamed = (1 if kt == 1 else g) * k_pad * d * 4
    cost = pl.CostEstimate(
        flops=2 * n_pad * k_pad * d,
        transcendentals=0,
        bytes_accessed=n_pad * 4 + n_pad * d * 4 + weight_bytes_streamed,
    )

    out_shape = jax.ShapeDtypeStruct((n_pad, d), weight.dtype)

    if plan["mode"] == "resident":
        if _HAS_SINGLE_BUFFER:
            w_spec = pl.BlockSpec((k_pad, d), lambda i: (0, 0),
                                  pipeline_mode=pl.Buffered(1))
        else:
            w_spec = pl.BlockSpec((k_pad, d), lambda i: (0, 0))
        call = pl.pallas_call(
            _gather_kernel_resident,
            out_shape=out_shape,
            grid_spec=pltpu.PrefetchScalarGridSpec(
                num_scalar_prefetch=0,
                grid=(g,),
                in_specs=[pl.BlockSpec((tq, 1), lambda i: (i, 0)), w_spec],
                out_specs=pl.BlockSpec((tq, d), lambda i: (i, 0)),
            ),
            compiler_params=pltpu.CompilerParams(
                dimension_semantics=("parallel",),
                vmem_limit_bytes=vmem_limit,
            ),
            cost_estimate=cost,
        )
    else:
        kernel = functools.partial(_gather_kernel_ktiled, tk=tk)
        call = pl.pallas_call(
            kernel,
            out_shape=out_shape,
            grid_spec=pltpu.PrefetchScalarGridSpec(
                num_scalar_prefetch=0,
                grid=(g, kt),
                in_specs=[
                    pl.BlockSpec((tq, 1), lambda i, kb: (i, 0)),   # ids column
                    pl.BlockSpec((tk, d), lambda i, kb: (kb, 0)),  # codebook slice
                ],
                out_specs=pl.BlockSpec((tq, d), lambda i, kb: (i, 0)),
            ),
            compiler_params=pltpu.CompilerParams(
                dimension_semantics=("parallel", "arbitrary"),
                vmem_limit_bytes=vmem_limit,
            ),
            cost_estimate=cost,
        )

    out = call(ids_col, w_in)
    out = out[:n]
    return out.reshape(orig_shape + (d,))


def make_codebook_weight(key, num_tokens, codebook_dim):
    w = jax.random.normal(key, (num_tokens, codebook_dim), dtype=jnp.float32)
    # l2norm along last dim (F.normalize p=2 dim=-1)
    norm = jnp.sqrt(jnp.sum(w * w, axis=-1, keepdims=True))
    return w / jnp.maximum(norm, 1e-12)


if __name__ == "__main__":
    num_tokens = 256
    codebook_dim = 128

    key = jax.random.PRNGKey(0)
    k_w, k_id, k_id2 = jax.random.split(key, 3)

    weight = make_codebook_weight(k_w, num_tokens, codebook_dim)

    # forward: F.embedding(embed_id, weight)
    embed_id = jax.random.randint(k_id, (2, 64), 0, num_tokens, dtype=jnp.int32)
    out = jax.block_until_ready(codebook_embedding(embed_id, weight))
    ref = jnp.take(weight, embed_id, axis=0)
    assert out.shape == embed_id.shape + (codebook_dim,)
    assert out.dtype == weight.dtype
    assert jnp.allclose(out, ref, atol=0.0, rtol=0.0)

    # ragged shape exercises the padding / slicing path
    embed_id2 = jax.random.randint(k_id2, (3, 5), 0, num_tokens, dtype=jnp.int32)
    out2 = jax.block_until_ready(codebook_embedding(embed_id2, weight))
    ref2 = jnp.take(weight, embed_id2, axis=0)
    assert jnp.allclose(out2, ref2, atol=0.0, rtol=0.0)

    print("KERNEL_OK")
</pallas_src>

<mosaic_0001>
module attributes {stable_mosaic.version = 11 : i64} {
  func.func @_gather_kernel_resident(%arg0: i32, %arg1: memref<128x1xi32, #tpu.memory_space<vmem>>, %arg2: memref<256x128xf32, #tpu.memory_space<vmem>>, %arg3: memref<128x128xf32, #tpu.memory_space<vmem>>) attributes {dimension_semantics = [#tpu.dimension_semantics<parallel>], iteration_bounds = array<i64: 1>, scalar_prefetch = 0 : i64, scratch_operands = 0 : i64, tpu.core_type = #tpu.core_type<tc>, window_params = [{transform_indices = @transform_0, window_bounds = array<i64: 128, 1>}, {pipeline_mode = #tpu.pipeline_mode<synchronous>, transform_indices = @transform_1, window_bounds = array<i64: 256, 128>}, {transform_indices = @transform_2, window_bounds = array<i64: 128, 128>}]} {
    %c0 = arith.constant 0 : index
    %c0_0 = arith.constant 0 : index
    %0 = vector.load %arg1[%c0, %c0_0] : memref<128x1xi32, #tpu.memory_space<vmem>>, vector<128x1xi32>
    %1 = tpu.iota {dimensions = array<i32: 1>} : vector<128x256xi32>
    %2 = vector.broadcast %0 : vector<128x1xi32> to vector<128x256xi32>
    %3 = arith.cmpi eq, %2, %1 : vector<128x256xi32>
    %4 = arith.extui %3 : vector<128x256xi1> to vector<128x256xi32>
    %5 = arith.sitofp %4 : vector<128x256xi32> to vector<128x256xf32>
    %c0_1 = arith.constant 0 : index
    %c0_2 = arith.constant 0 : index
    %6 = vector.load %arg2[%c0_1, %c0_2] : memref<256x128xf32, #tpu.memory_space<vmem>>, vector<256x128xf32>
    %cst = arith.constant dense<0.000000e+00> : vector<128x128xf32>
    %7 = tpu.matmul %5, %6, %cst {dimension_numbers = #tpu.dot_dimension_numbers<[1], [0], [0], [1], [0, 0, 1, 1], [], []>} : vector<128x256xf32>, vector<256x128xf32>, vector<128x128xf32> -> vector<128x128xf32>
    %c0_3 = arith.constant 0 : index
    %c0_4 = arith.constant 0 : index
    %8 = vector.load %arg3[%c0_3, %c0_4] : memref<128x128xf32, #tpu.memory_space<vmem>>, vector<128x128xf32>
    tpu.vector_store %arg3[%c0_3, %c0_4], %7 {strides = array<i32>} : memref<128x128xf32, #tpu.memory_space<vmem>>, vector<128x128xf32>,
    return
  }
  func.func @transform_0(%arg0: i32) -> (i32, i32) {
    %c0_i32 = arith.constant 0 : i32
    %c0_i32_0 = arith.constant 0 : i32
    return %arg0, %c0_i32 : i32, i32
  }
  func.func @transform_1(%arg0: i32) -> (i32, i32) {
    %c0_i32 = arith.constant 0 : i32
    %c0_i32_0 = arith.constant 0 : i32
    %c0_i32_1 = arith.constant 0 : i32
    return %c0_i32, %c0_i32_0 : i32, i32
  }
  func.func @transform_2(%arg0: i32) -> (i32, i32) {
    %c0_i32 = arith.constant 0 : i32
    %c0_i32_0 = arith.constant 0 : i32
    return %arg0, %c0_i32 : i32, i32
  }
}

</mosaic_0001>

<bundles_post_ra>
// kernel: tpu_custom_call.1
= control target key start
LH: loop header
LB: loop body
LE: loop exit
PB: predicated region body
PF: predicated region fallthrough
CT: control target
= control target key end

     0   :  { %7 = vsyncpa [#allocation3], 0  ;;  %s695_s0 = inlined_call_operand.vmem [shape: s32[128,1], index: 0, kind: input, shape index: {}]   ;;  %s696_s1 = inlined_call_operand.hbm [shape: f32[256,128], index: 1, kind: input, shape index: {}]   ;;  %s697_s2 = inlined_call_operand.hbm [shape: f32[128,128], index: 2, kind: output, shape index: {}]  }
   0x1   :  { %8 = vsyncpa [#allocation4], 0  ;;  %s15_s11 = sshll.u32 %s696_s1, 4  ;;  %s545_s12 = smov [#allocation2]   ;;  %s16_s11 = int_to_ptr.hbm [resolvable:$true] %s15_s11 }
   0x2   :  { %s17_s13 = sshll.u32 %s545_s12, 4  ;;  %s546_s14 = smov 128   ;;  %s18_s13 = int_to_ptr.vmem [resolvable:$true] %s17_s13 }
   0x3   :  { %s547_s15 = smov 8  }
   0x4   :  { %23 = dma.hbm_to_vmem [thread:$0]  %s16_s11, 4096, %s18_s13, [#allocation3], %s546_s14, %s546_s14, %s547_s15  }
   0x5   :  { %541 = dma.done.wait [#allocation3], 4096  }
   0x6   :  { %542 = vsyncadd [#allocation3], 4294963200  ;;  %v548_v0 = vmov 0   ;;  %v37_v1 = vld [vmem:[%s695_s0 + $0x48] sm:$0xff]  ;;  %v36_v2 = vld [vmem:[%s695_s0 + $0x40] sm:$0xff]  ;;  %v44_v49 = vlaneseq  ;;  %v549_v53 = vmov 1.0  }
   0x7   :  { %491 = vset.pattern.permute.xlu1 %v548_v0  ;;  %490 = vset.pattern.permute.xlu0 %v548_v0  ;;  %v38_v3 = vld [vmem:[%s695_s0 + $0x50] sm:$0xff]  ;;  %v29_v4 = vld [vmem:[%s695_s0 + $0x8] sm:$0xff]  ;;  %v28_v5 = vld [vmem:[%s695_s0] sm:$0xff]  ;;  %s375_s23 = sshll.u32 %s697_s2, 4  ;;  %s376_s23 = int_to_ptr.hbm [resolvable:$true] %s375_s23 }
   0x8   :  { %492 = vset.pattern.permute.xlu2 %v548_v0  ;;  %75 = vperm.xlu1 %491, %v37_v1   ;;  %v30_v6 = vld [vmem:[%s695_s0 + $0x10] sm:$0xff]  ;;  %v206_v7 = vld [vmem:[#allocation2 + $0x78] sm:$0xff]  ;;  %v204_v11 = vld [vmem:[#allocation2 + $0x68] sm:$0xff]  ;;  %v620_v50 = vand.u32 127, %v44_v49 }
   0x9   :  { %72 = vperm.xlu0 %490, %v36_v2   ;;  %78 = vperm.xlu2 %492, %v38_v3   ;;  %v222_v8 = vld [vmem:[#allocation2 + $0xf8] sm:$0xff]  ;;  %v205_v9 = vld [vmem:[#allocation2 + $0x70] sm:$0xff]  ;;  %v220_v12 = vld [vmem:[#allocation2 + $0xe8] sm:$0xff] }
   0xa   :  { %452 = vmatpush.msra.mxu2 %v206_v7  ;;  %v221_v10 = vld [vmem:[#allocation2 + $0xf0] sm:$0xff]  ;;  %468 = vmatpush.msra.mxu3 %v222_v8  ;;  %v203_v13 = vld [vmem:[#allocation2 + $0x60] sm:$0xff]  ;;  %v31_v14 = vld [vmem:[%s695_s0 + $0x18] sm:$0xff]  ;;  %v623_v51 = vadd.s32 128, %v620_v50 }
   0xb   :  { %223 = vmatpush.msra.mxu0 %v206_v7  ;;  %288 = vmatpush.msra.mxu1 %v222_v8  ;;  %v39_v15 = vld [vmem:[%s695_s0 + $0x58] sm:$0xff]  ;;  %v40_v16 = vld [vmem:[%s695_s0 + $0x60] sm:$0xff]  ;;  %v201_v20 = vld [vmem:[#allocation2 + $0x50] sm:$0xff] }
   0xc   :  { %453 = vmatpush.msra.mxu2 %v205_v9  ;;  %469 = vmatpush.msra.mxu3 %v221_v10  ;;  %v219_v17 = vld [vmem:[#allocation2 + $0xe0] sm:$0xff]  ;;  %v202_v18 = vld [vmem:[#allocation2 + $0x58] sm:$0xff]  ;;  %v217_v21 = vld [vmem:[#allocation2 + $0xd0] sm:$0xff] }
   0xd   :  { %224 = vmatpush.msra.mxu0 %v205_v9  ;;  %289 = vmatpush.msra.mxu1 %v221_v10  ;;  %v218_v19 = vld [vmem:[#allocation2 + $0xd8] sm:$0xff]  ;;  %v200_v22 = vld [vmem:[#allocation2 + $0x48] sm:$0xff]  ;;  %v32_v25 = vld [vmem:[%s695_s0 + $0x20] sm:$0xff] }
   0xe   :  { %454 = vmatpush.msra.mxu2 %v204_v11  ;;  %470 = vmatpush.msra.mxu3 %v220_v12  ;;  %v216_v23 = vld [vmem:[#allocation2 + $0xc8] sm:$0xff]  ;;  %v34_v27 = vld [vmem:[%s695_s0 + $0x30] sm:$0xff]  ;;  %v43_v29 = vld [vmem:[%s695_s0 + $0x78] sm:$0xff] }
   0xf   :  { %225 = vmatpush.msra.mxu0 %v204_v11  ;;  %290 = vmatpush.msra.mxu1 %v220_v12  ;;  %v41_v24 = vld [vmem:[%s695_s0 + $0x68] sm:$0xff]  ;;  %v42_v28 = vld [vmem:[%s695_s0 + $0x70] sm:$0xff]  ;;  %v35_v30 = vld [vmem:[%s695_s0 + $0x38] sm:$0xff] }
  0x10   :  { %51 = vperm.xlu1 %491, %v29_v4   ;;  %455 = vmatpush.msra.mxu2 %v203_v13  ;;  %v33_v26 = vld [vmem:[%s695_s0 + $0x28] sm:$0xff]  ;;  %v199_v31 = vld [vmem:[#allocation2 + $0x40] sm:$0xff]  ;;  %v198_v33 = vld [vmem:[#allocation2 + $0x38] sm:$0xff]  ;;  %s550_s0 = smov [#allocation5]  }
  0x11   :  { %48 = vperm.xlu0 %490, %v28_v5   ;;  %54 = vperm.xlu2 %492, %v30_v6   ;;  %v215_v32 = vld [vmem:[#allocation2 + $0xc0] sm:$0xff]  ;;  %v214_v34 = vld [vmem:[#allocation2 + $0xb8] sm:$0xff]  ;;  %v197_v35 = vld [vmem:[#allocation2 + $0x30] sm:$0xff]  ;;  %s373_s20 = sshll.u32 %s550_s0, 4  ;;  %s374_s20 = int_to_ptr.vmem [resolvable:$true] %s373_s20 }
  0x12   :  { %471 = vmatpush.msra.mxu3 %v219_v17  ;;  %456 = vmatpush.msra.mxu2 %v202_v18  ;;  %v213_v36 = vld [vmem:[#allocation2 + $0xb0] sm:$0xff]  ;;  %v196_v37 = vld [vmem:[#allocation2 + $0x28] sm:$0xff]  ;;  %v195_v39 = vld [vmem:[#allocation2 + $0x20] sm:$0xff] }
  0x13   :  { %226 = vmatpush.msra.mxu0 %v203_v13  ;;  %291 = vmatpush.msra.mxu1 %v219_v17  ;;  %v212_v38 = vld [vmem:[#allocation2 + $0xa8] sm:$0xff]  ;;  %v211_v40 = vld [vmem:[#allocation2 + $0xa0] sm:$0xff]  ;;  %v194_v41 = vld [vmem:[#allocation2 + $0x18] sm:$0xff] }
  0x14   :  { %472 = vmatpush.msra.mxu3 %v218_v19  ;;  %457 = vmatpush.msra.mxu2 %v201_v20  ;;  %v210_v42 = vld [vmem:[#allocation2 + $0x98] sm:$0xff]  ;;  %v193_v43 = vld [vmem:[#allocation2 + $0x10] sm:$0xff]  ;;  %v192_v45 = vld [vmem:[#allocation2 + $0x8] sm:$0xff] }
  0x15   :  { %227 = vmatpush.msra.mxu0 %v202_v18  ;;  %292 = vmatpush.msra.mxu1 %v218_v19  ;;  %v209_v44 = vld [vmem:[#allocation2 + $0x90] sm:$0xff]  ;;  %v208_v46 = vld [vmem:[#allocation2 + $0x88] sm:$0xff]  ;;  %v191_v47 = vld [vmem:[#allocation2] sm:$0xff] }
  0x16   :  { %473 = vmatpush.msra.mxu3 %v217_v21  ;;  %458 = vmatpush.msra.mxu2 %v200_v22  ;;  %v207_v48 = vld [vmem:[#allocation2 + $0x80] sm:$0xff] }
  0x17   :  { %228 = vmatpush.msra.mxu0 %v201_v20  ;;  %293 = vmatpush.msra.mxu1 %v217_v21 }
  0x18   :  { %57 = vperm.xlu1 %491, %v31_v14   ;;  %474 = vmatpush.msra.mxu3 %v216_v23 }
  0x19   :  { %81 = vperm.xlu0 %490, %v39_v15   ;;  %84 = vperm.xlu2 %492, %v40_v16  }
  0x1a   :  { %229 = vmatpush.msra.mxu0 %v200_v22  ;;  %294 = vmatpush.msra.mxu1 %v216_v23 }
  0x1b   :  { %459 = vmatpush.msra.mxu2 %v199_v31  ;;  %475 = vmatpush.msra.mxu3 %v215_v32 }
  0x1c   :  { %230 = vmatpush.msra.mxu0 %v199_v31  ;;  %295 = vmatpush.msra.mxu1 %v215_v32 }
  0x1d   :  { %460 = vmatpush.msra.mxu2 %v198_v33  ;;  %476 = vmatpush.msra.mxu3 %v214_v34 }
  0x1e   :  { %231 = vmatpush.msra.mxu0 %v198_v33  ;;  %296 = vmatpush.msra.mxu1 %v214_v34 }
  0x1f   :  { %461 = vmatpush.msra.mxu2 %v197_v35  ;;  %477 = vmatpush.msra.mxu3 %v213_v36 }
  0x20   :  { %87 = vperm.xlu1 %491, %v41_v24   ;;  %232 = vmatpush.msra.mxu0 %v197_v35 }
  0x21   :  { %60 = vperm.xlu0 %490, %v32_v25   ;;  %63 = vperm.xlu2 %492, %v33_v26  }
  0x22   :  { %297 = vmatpush.msra.mxu1 %v213_v36  ;;  %462 = vmatpush.msra.mxu2 %v196_v37 }
  0x23   :  { %478 = vmatpush.msra.mxu3 %v212_v38  ;;  %233 = vmatpush.msra.mxu0 %v196_v37 }
  0x24   :  { %298 = vmatpush.msra.mxu1 %v212_v38  ;;  %463 = vmatpush.msra.mxu2 %v195_v39 }
  0x25   :  { %479 = vmatpush.msra.mxu3 %v211_v40  ;;  %234 = vmatpush.msra.mxu0 %v195_v39 }
  0x26   :  { %299 = vmatpush.msra.mxu1 %v211_v40  ;;  %464 = vmatpush.msra.mxu2 %v194_v41 }
  0x27   :  { %480 = vmatpush.msra.mxu3 %v210_v42  ;;  %235 = vmatpush.msra.mxu0 %v194_v41 }
  0x28   :  { %66 = vperm.xlu1 %491, %v34_v27   ;;  %300 = vmatpush.msra.mxu1 %v210_v42 }
  0x29   :  { %90 = vperm.xlu0 %490, %v42_v28   ;;  %93 = vperm.xlu2 %492, %v43_v29  }
  0x2a   :  { %465 = vmatpush.msra.mxu2 %v193_v43  ;;  %481 = vmatpush.msra.mxu3 %v209_v44 }
  0x2b   :  { %236 = vmatpush.msra.mxu0 %v193_v43  ;;  %301 = vmatpush.msra.mxu1 %v209_v44 }
  0x2c   :  { %466 = vmatpush.msra.mxu2 %v192_v45  ;;  %482 = vmatpush.msra.mxu3 %v208_v46 }
  0x2d   :  { %237 = vmatpush.msra.mxu0 %v192_v45  ;;  %302 = vmatpush.msra.mxu1 %v208_v46 }
  0x2e   :  { %467 = vmatpush.msra.mxu2 %v191_v47  ;;  %483 = vmatpush.msra.mxu3 %v207_v48 }
  0x2f   :  { %238 = vmatpush.msra.mxu0 %v191_v47  ;;  %303 = vmatpush.msra.mxu1 %v207_v48 }
  0x31   :  { %69 = vperm.xlu0 %490, %v35_v30  }
  0x63   :  { %v79_v56 = vpop.permute.xlu2 %78 }
  0x64   :  { %vm115_vm6 = vcmp.eq.s32.totalorder %v79_v56, %v620_v50  ;;  %vm116_vm7 = vcmp.eq.s32.totalorder %v79_v56, %v623_v51 }
  0x6b   :  { %v55_v58 = vpop.permute.xlu2 %54 }
  0x6c   :  { %vm99_vm10 = vcmp.eq.s32.totalorder %v55_v58, %v620_v50  ;;  %vm100_vm12 = vcmp.eq.s32.totalorder %v55_v58, %v623_v51 }
  0x73   :  { %v85_v61 = vpop.permute.xlu2 %84 }
  0x74   :  { %vm119_vm15 = vcmp.eq.s32.totalorder %v85_v61, %v620_v50 }
  0x7a   :  { %v76_v54 = vpop.permute.xlu1 %75 }
  0x7b   :  { %v73_v52 = vpop.permute.xlu0 %72  ;;  %vm113_vm2 = vcmp.eq.s32.totalorder %v76_v54, %v620_v50  ;;  %vm114_vm3 = vcmp.eq.s32.totalorder %v76_v54, %v623_v51  ;;  %v64_v0 = vpop.permute.xlu2 %63 }
  0x7c   :  { %vm111_vm0 = vcmp.eq.s32.totalorder %v73_v52, %v620_v50  ;;  %vm112_vm1 = vcmp.eq.s32.totalorder %v73_v52, %v623_v51 }
  0x7d   :  { %428 = vmatmul.msk.f32.vlgmr.msra.gmra.mxu2 %vm111_vm0, %v549_v53  ;;  %444 = vmatmul.msk.f32.vlgmr.msra.gmra.mxu3 %vm112_vm1, %v549_v53  ;;  %vm120_vm1 = vcmp.eq.s32.totalorder %v85_v61, %v623_v51 }
  0x82   :  { %v52_v57 = vpop.permute.xlu1 %51 }
  0x83   :  { %v49_v55 = vpop.permute.xlu0 %48  ;;  %vm97_vm8 = vcmp.eq.s32.totalorder %v52_v57, %v620_v50  ;;  %vm98_vm9 = vcmp.eq.s32.totalorder %v52_v57, %v623_v51  ;;  %v94_v2 = vpop.permute.xlu2 %93 }
  0x84   :  { %vm95_vm4 = vcmp.eq.s32.totalorder %v49_v55, %v620_v50  ;;  %vm96_vm5 = vcmp.eq.s32.totalorder %v49_v55, %v623_v51 }
  0x85   :  { %420 = vmatmul.msk.f32.vlgmr.msra.gmra.mxu0 %vm95_vm4, %v549_v53  ;;  %429 = vmatmul.msk.f32.gmra.mxu2 %vm113_vm2, %v549_v53 }
  0x86   :  { %436 = vmatmul.msk.f32.vlgmr.msra.gmra.mxu1 %vm96_vm5, %v549_v53  ;;  %445 = vmatmul.msk.f32.gmra.mxu3 %vm114_vm3, %v549_v53 }
  0x8a   :  { %v58_v60 = vpop.permute.xlu1 %57 }
  0x8b   :  { %v82_v59 = vpop.permute.xlu0 %81  ;;  %vm101_vm14 = vcmp.eq.s32.totalorder %v58_v60, %v620_v50  ;;  %vm102_vm0 = vcmp.eq.s32.totalorder %v58_v60, %v623_v51 }
  0x8c   :  { %vm117_vm11 = vcmp.eq.s32.totalorder %v82_v59, %v620_v50  ;;  %vm118_vm13 = vcmp.eq.s32.totalorder %v82_v59, %v623_v51 }
  0x8d   :  { %421 = vmatmul.msk.f32.gmra.mxu0 %vm97_vm8, %v549_v53  ;;  %430 = vmatmul.msk.f32.gmra.mxu2 %vm115_vm6, %v549_v53  ;;  %vm105_vm6 = vcmp.eq.s32.totalorder %v64_v0, %v620_v50  ;;  %vm106_vm8 = vcmp.eq.s32.totalorder %v64_v0, %v623_v51 }
  0x8e   :  { %437 = vmatmul.msk.f32.gmra.mxu1 %vm98_vm9, %v549_v53  ;;  %446 = vmatmul.msk.f32.gmra.mxu3 %vm116_vm7, %v549_v53 }
  0x92   :  { %v88_v63 = vpop.permute.xlu1 %87 }
  0x93   :  { %v61_v62 = vpop.permute.xlu0 %60  ;;  %vm121_vm3 = vcmp.eq.s32.totalorder %v88_v63, %v620_v50  ;;  %vm122_vm5 = vcmp.eq.s32.totalorder %v88_v63, %v623_v51 }
  0x94   :  { %vm103_vm2 = vcmp.eq.s32.totalorder %v61_v62, %v620_v50  ;;  %vm104_vm4 = vcmp.eq.s32.totalorder %v61_v62, %v623_v51 }
  0x95   :  { %422 = vmatmul.msk.f32.gmra.mxu0 %vm99_vm10, %v549_v53  ;;  %431 = vmatmul.msk.f32.gmra.mxu2 %vm117_vm11, %v549_v53  ;;  %vm125_vm10 = vcmp.eq.s32.totalorder %v94_v2, %v620_v50 }
  0x96   :  { %438 = vmatmul.msk.f32.gmra.mxu1 %vm100_vm12, %v549_v53  ;;  %447 = vmatmul.msk.f32.gmra.mxu3 %vm118_vm13, %v549_v53  ;;  %vm126_vm12 = vcmp.eq.s32.totalorder %v94_v2, %v623_v51 }
  0x9a   :  { %v67_v3 = vpop.permute.xlu1 %66 }
  0x9b   :  { %v91_v1 = vpop.permute.xlu0 %90  ;;  %vm107_vm11 = vcmp.eq.s32.totalorder %v67_v3, %v620_v50  ;;  %vm108_vm13 = vcmp.eq.s32.totalorder %v67_v3, %v623_v51 }
  0x9c   :  { %vm123_vm7 = vcmp.eq.s32.totalorder %v91_v1, %v620_v50  ;;  %vm124_vm9 = vcmp.eq.s32.totalorder %v91_v1, %v623_v51 }
  0x9d   :  { %423 = vmatmul.msk.f32.gmra.mxu0 %vm101_vm14, %v549_v53  ;;  %432 = vmatmul.msk.f32.gmra.mxu2 %vm119_vm15, %v549_v53 }
  0x9e   :  { %439 = vmatmul.msk.f32.gmra.mxu1 %vm102_vm0, %v549_v53  ;;  %448 = vmatmul.msk.f32.gmra.mxu3 %vm120_vm1, %v549_v53 }
  0xa3   :  { %v70_v4 = vpop.permute.xlu0 %69 }
  0xa4   :  { %vm109_vm14 = vcmp.eq.s32.totalorder %v70_v4, %v620_v50  ;;  %vm110_vm15 = vcmp.eq.s32.totalorder %v70_v4, %v623_v51 }
  0xa5   :  { %424 = vmatmul.msk.f32.gmra.mxu0 %vm103_vm2, %v549_v53  ;;  %433 = vmatmul.msk.f32.gmra.mxu2 %vm121_vm3, %v549_v53 }
  0xa6   :  { %440 = vmatmul.msk.f32.gmra.mxu1 %vm104_vm4, %v549_v53  ;;  %449 = vmatmul.msk.f32.gmra.mxu3 %vm122_vm5, %v549_v53 }
  0xad   :  { %425 = vmatmul.msk.f32.gmra.mxu0 %vm105_vm6, %v549_v53  ;;  %434 = vmatmul.msk.f32.gmra.mxu2 %vm123_vm7, %v549_v53 }
  0xae   :  { %441 = vmatmul.msk.f32.gmra.mxu1 %vm106_vm8, %v549_v53  ;;  %450 = vmatmul.msk.f32.gmra.mxu3 %vm124_vm9, %v549_v53 }
  0xb5   :  { %426 = vmatmul.msk.f32.gmra.mxu0 %vm107_vm11, %v549_v53  ;;  %435 = vmatmul.msk.f32.gmra.mxu2 %vm125_vm10, %v549_v53 }
  0xb6   :  { %442 = vmatmul.msk.f32.gmra.mxu1 %vm108_vm13, %v549_v53  ;;  %451 = vmatmul.msk.f32.gmra.mxu3 %vm126_vm12, %v549_v53 }
  0xbd   :  { %427 = vmatmul.msk.f32.gmra.mxu0 %vm109_vm14, %v549_v53 }
  0xbe   :  { %443 = vmatmul.msk.f32.gmra.mxu1 %vm110_vm15, %v549_v53 }
 0x100   :  { %v264_v5 = vpop.f32.mrf.mxu2  ;;  %v329_v6 = vpop.f32.mrf.mxu3 }
 0x101   :  { %v330_v7 = vadd.f32 %v329_v6, %v264_v5 }
 0x102   :  { %v240_v8 = vpop.f32.mrf.mxu0 }
 0x103   :  { %361 = vst [vmem:[#allocation5 + $0x40] sm:$0xff] %v330_v7  ;;  %v305_v9 = vpop.f32.mrf.mxu1 }
 0x104   :  { %v306_v10 = vadd.f32 %v305_v9, %v240_v8 }
 0x106   :  { %353 = vst [vmem:[#allocation5] sm:$0xff] %v306_v10 }
 0x108   :  { %v267_v11 = vpop.f32.mrf.mxu2 }
 0x109   :  { %v332_v12 = vpop.f32.mrf.mxu3 }
 0x10a   :  { %v333_v13 = vadd.f32 %v332_v12, %v267_v11  ;;  %v243_v14 = vpop.f32.mrf.mxu0 }
 0x10b   :  { %v308_v15 = vpop.f32.mrf.mxu1 }
 0x10c   :  { %362 = vst [vmem:[#allocation5 + $0x48] sm:$0xff] %v333_v13  ;;  %v309_v16 = vadd.f32 %v308_v15, %v243_v14 }
 0x10e   :  { %354 = vst [vmem:[#allocation5 + $0x8] sm:$0xff] %v309_v16 }
 0x110   :  { %v270_v17 = vpop.f32.mrf.mxu2 }
 0x111   :  { %v335_v18 = vpop.f32.mrf.mxu3 }
 0x112   :  { %v336_v19 = vadd.f32 %v335_v18, %v270_v17  ;;  %v246_v20 = vpop.f32.mrf.mxu0 }
 0x113   :  { %v311_v21 = vpop.f32.mrf.mxu1 }
 0x114   :  { %363 = vst [vmem:[#allocation5 + $0x50] sm:$0xff] %v336_v19  ;;  %v312_v22 = vadd.f32 %v311_v21, %v246_v20 }
 0x116   :  { %355 = vst [vmem:[#allocation5 + $0x10] sm:$0xff] %v312_v22 }
 0x118   :  { %v273_v23 = vpop.f32.mrf.mxu2 }
 0x119   :  { %v338_v24 = vpop.f32.mrf.mxu3 }
 0x11a   :  { %v339_v25 = vadd.f32 %v338_v24, %v273_v23  ;;  %v249_v26 = vpop.f32.mrf.mxu0 }
 0x11b   :  { %v314_v27 = vpop.f32.mrf.mxu1 }
 0x11c   :  { %364 = vst [vmem:[#allocation5 + $0x58] sm:$0xff] %v339_v25  ;;  %v315_v28 = vadd.f32 %v314_v27, %v249_v26 }
 0x11e   :  { %356 = vst [vmem:[#allocation5 + $0x18] sm:$0xff] %v315_v28 }
 0x120   :  { %v276_v29 = vpop.f32.mrf.mxu2 }
 0x121   :  { %v341_v30 = vpop.f32.mrf.mxu3 }
 0x122   :  { %v342_v31 = vadd.f32 %v341_v30, %v276_v29  ;;  %v252_v32 = vpop.f32.mrf.mxu0 }
 0x123   :  { %v317_v33 = vpop.f32.mrf.mxu1 }
 0x124   :  { %365 = vst [vmem:[#allocation5 + $0x60] sm:$0xff] %v342_v31  ;;  %v318_v34 = vadd.f32 %v317_v33, %v252_v32 }
 0x126   :  { %357 = vst [vmem:[#allocation5 + $0x20] sm:$0xff] %v318_v34 }
 0x128   :  { %v279_v35 = vpop.f32.mrf.mxu2 }
 0x129   :  { %v344_v36 = vpop.f32.mrf.mxu3 }
 0x12a   :  { %v345_v37 = vadd.f32 %v344_v36, %v279_v35  ;;  %v255_v38 = vpop.f32.mrf.mxu0 }
 0x12b   :  { %v320_v39 = vpop.f32.mrf.mxu1 }
 0x12c   :  { %366 = vst [vmem:[#allocation5 + $0x68] sm:$0xff] %v345_v37  ;;  %v321_v40 = vadd.f32 %v320_v39, %v255_v38 }
 0x12e   :  { %358 = vst [vmem:[#allocation5 + $0x28] sm:$0xff] %v321_v40 }
 0x130   :  { %v282_v41 = vpop.f32.mrf.mxu2 }
 0x131   :  { %v347_v42 = vpop.f32.mrf.mxu3 }
 0x132   :  { %v348_v43 = vadd.f32 %v347_v42, %v282_v41  ;;  %v258_v44 = vpop.f32.mrf.mxu0 }
 0x133   :  { %v323_v45 = vpop.f32.mrf.mxu1 }
 0x134   :  { %367 = vst [vmem:[#allocation5 + $0x70] sm:$0xff] %v348_v43  ;;  %v324_v46 = vadd.f32 %v323_v45, %v258_v44 }
 0x136   :  { %359 = vst [vmem:[#allocation5 + $0x30] sm:$0xff] %v324_v46 }
 0x138   :  { %v285_v47 = vpop.f32.mrf.mxu2 }
 0x139   :  { %v350_v48 = vpop.f32.mrf.mxu3 }
 0x13a   :  { %v351_v49 = vadd.f32 %v350_v48, %v285_v47  ;;  %v261_v50 = vpop.f32.mrf.mxu0 }
 0x13b   :  { %v326_v51 = vpop.f32.mrf.mxu1 }
 0x13c   :  { %368 = vst [vmem:[#allocation5 + $0x78] sm:$0xff] %v351_v49  ;;  %v327_v52 = vadd.f32 %v326_v51, %v261_v50 }
 0x13e   :  { %360 = vst [vmem:[#allocation5 + $0x38] sm:$0xff] %v327_v52 }
 0x13f   :  { %381 = dma.vmem_to_hbm [thread:$0]  %s374_s20, 2048, %s376_s23, [#allocation4], %s546_s14, %s546_s14, %s547_s15  }
 0x140   :  { %543 = dma.done.wait [#allocation4], 2048  }
 0x141   :  { %544 = vsyncadd [#allocation4], 4294965248 }
 0x142   :  { %386 = vsyncpa [#allocation3], 1 }
 0x143   :  { %387 = vsyncpa [#allocation4], 1 }

</bundles_post_ra>
